<compile_context>
chip_gen: v7x
topology: tpu7x:2x2x1
jax: 0.10.0
libtpu: 0.0.40
codegen_flags: <defaults>
</compile_context>

<pallas_src>
import functools

import jax
import jax.numpy as jnp
from jax import lax
from jax.experimental import pallas as pl
from jax.experimental.pallas import tpu as pltpu

_MAX_TILE_V = 8192          # lanes per vocab chunk for large vocabularies


def _sublane(itemsize):
    # sublane packing of the second-to-last dim: f32 -> 8, bf16 -> 16, int8 -> 32
    return {4: 8, 2: 16, 1: 32}.get(int(itemsize), 8)


def _vmem_capacity_bytes():
    """Per-core VMEM capacity; conservative fallback if the query fails."""
    try:
        info = pltpu.get_tpu_info()
        cap = int(getattr(info, "vmem_capacity_bytes", 0) or 0)
        if cap > 0:
            return cap
    except Exception:
        pass
    return 64 << 20          # v7x per-core size; safe lower bound everywhere


def _choose_tiles(n_rows, n_cols, itemsize, vmem_cap):
    """Pick (tile_rows, tile_v) from a generation-aware VMEM budget."""
    sub = _sublane(itemsize)
    tile_v = n_cols if n_cols <= _MAX_TILE_V else _MAX_TILE_V
    # Per-row VMEM cost estimate:
    #   2 x logits block (double-buffered pipeline)   : 2 * tile_v * itemsize
    #   2 x labels block + 3 x (TR,1) f32 scratch     : 5 * 512  (lane-padded)
    #   Mosaic-materialized f32 temporaries (~3 blk)  : 3 * tile_v * 4
    per_row = 2 * tile_v * itemsize + 5 * 512 + 3 * tile_v * 4
    budget = (vmem_cap * 3) // 5
    tile_rows = max(sub, (budget // per_row) // sub * sub)
    if tile_rows >= n_rows:
        if n_rows > sub:
            # Keep at least two row tiles so the "parallel" row axis can be
            # sharded across both TensorCores on megacore parts (v7x).
            half = (n_rows + 1) // 2
            tile_rows = ((half + sub - 1) // sub) * sub
        else:
            tile_rows = n_rows       # full-dim block is always legal
    return tile_rows, tile_v


def _ce_kernel(logits_ref, labels_ref, sum_ref, cnt_ref,
               m_sc, s_sc, p_sc, *,
               ignore_index, n_rows, n_cols, tile_rows, tile_v, n_v_chunks):
    """One (row-tile, vocab-chunk) grid step of masked cross entropy.

    Grid = (num_row_tiles ["parallel"], num_vocab_chunks ["arbitrary"]).
    Online log-sum-exp across vocab chunks; per-row-tile partial (sum, count)
    is written at the last vocab chunk and reduced in the wrapper.
    """
    # All grid-index reads happen at the top level of the kernel body (never
    # inside pl.when closures) so they lower cleanly on every backend.
    i = pl.program_id(0)                         # row tile
    j = pl.program_id(1)                         # vocab chunk (innermost)
    is_first = j == 0
    is_last = j == n_v_chunks - 1

    @pl.when(is_first)
    def _():
        m_sc[...] = jnp.full((tile_rows, 1), -jnp.inf, jnp.float32)  # running max
        s_sc[...] = jnp.zeros((tile_rows, 1), jnp.float32)           # running sum-exp
        p_sc[...] = jnp.zeros((tile_rows, 1), jnp.float32)           # picked logit

    labels = labels_ref[...]                                         # (TR, 1) int32
    # loop-invariant class-index iota within the chunk, (1, TV)
    lane = lax.broadcasted_iota(jnp.int32, (1, tile_v), 1)

    def update(x):
        # x: (TR, TV) in the *input* dtype (bf16 stays bf16 for compare/max);
        # invalid lanes (vocab tail) are already set to -inf by the caller.
        # one-hot pick of the label logit: shifted-label compare, invariant iota
        onehot = lane == (labels - j * tile_v)                       # (TR, TV)
        picked = jnp.sum(jnp.where(onehot, x, jnp.zeros((), x.dtype)),
                         axis=-1, keepdims=True)
        p_sc[...] += picked.astype(jnp.float32)
        # online log-sum-exp (max in input dtype is exact; exp/accum in f32)
        chunk_max = jnp.max(x, axis=-1, keepdims=True).astype(jnp.float32)
        m_new = jnp.maximum(m_sc[...], chunk_max)
        ex = jnp.exp(x.astype(jnp.float32) - m_new)
        s_sc[...] = (s_sc[...] * jnp.exp(m_sc[...] - m_new)
                     + jnp.sum(ex, axis=-1, keepdims=True))
        m_sc[...] = m_new

    v_tail = n_cols % tile_v                                         # static int
    if v_tail == 0:
        # vocab divides evenly: mask-free path on every chunk
        update(logits_ref[...])
    else:
        @pl.when(jnp.logical_not(is_last))
        def _():
            update(logits_ref[...])                                  # mask-free

        @pl.when(is_last)
        def _():
            x = logits_ref[...]
            neg = jnp.asarray(-jnp.inf, x.dtype)
            update(jnp.where(lane < v_tail, x, neg))                 # tail mask

    @pl.when(is_last)
    def _():
        not_pad = labels != ignore_index                             # (TR, 1)
        if n_rows % tile_rows != 0:
            row = i * tile_rows + lax.broadcasted_iota(
                jnp.int32, (tile_rows, 1), 0)
            valid = jnp.logical_and(row < n_rows, not_pad)
        else:
            valid = not_pad
        loss_rows = m_sc[...] + jnp.log(s_sc[...]) - p_sc[...]
        # where() (not multiply) so garbage/NaN from padded tail rows is dropped
        loss_rows = jnp.where(valid, loss_rows, 0.0)
        sum_ref[...] = jnp.sum(loss_rows, axis=0, keepdims=True).reshape(1, 1, 1)
        cnt_ref[...] = jnp.sum(valid.astype(jnp.float32), axis=0,
                               keepdims=True).reshape(1, 1, 1)


def cross_entropy_pallas(xs, y, ignore_index=None, tile_rows=None, tile_v=None):
    """xs: (B, S, V) logits (f32 or bf16); y: (B, S) int labels -> scalar f32 loss."""
    B, S, V = xs.shape
    # F.cross_entropy default ignore_index is -100; pad_index=None -> ignore nothing.
    ig = -100 if ignore_index is None else int(ignore_index)

    N = B * S
    logits = xs.reshape(N, V)                     # free reshape, no HBM copy
    labels = y.reshape(N, 1).astype(jnp.int32)

    itemsize = jnp.dtype(xs.dtype).itemsize
    cap = _vmem_capacity_bytes()
    auto_tr, auto_tv = _choose_tiles(N, V, itemsize, cap)
    tr = auto_tr if tile_rows is None else int(tile_rows)
    tv = auto_tv if tile_v is None else int(tile_v)

    grid_r = (N + tr - 1) // tr
    grid_v = (V + tv - 1) // tv

    # scoped-VMEM limit sized to the chosen tiles (+ temporaries + headroom),
    # capped below the per-core physical capacity.
    per_row = 2 * tv * itemsize + 5 * 512 + 3 * tv * 4
    est = tr * per_row + (8 << 20)
    vmem_limit = int(min(cap - (2 << 20), max(32 << 20, est)))
    vmem_limit = max(vmem_limit, 16 << 20)

    kernel = functools.partial(
        _ce_kernel, ignore_index=ig, n_rows=N, n_cols=V,
        tile_rows=tr, tile_v=tv, n_v_chunks=grid_v)

    sums, cnts = pl.pallas_call(
        kernel,
        out_shape=(jax.ShapeDtypeStruct((grid_r, 1, 1), jnp.float32),
                   jax.ShapeDtypeStruct((grid_r, 1, 1), jnp.float32)),
        grid_spec=pltpu.PrefetchScalarGridSpec(
            num_scalar_prefetch=0,
            grid=(grid_r, grid_v),
            in_specs=[
                pl.BlockSpec((tr, tv), lambda i, j: (i, j)),
                pl.BlockSpec((tr, 1), lambda i, j: (i, 0)),
            ],
            out_specs=[
                pl.BlockSpec((1, 1, 1), lambda i, j: (i, 0, 0)),
                pl.BlockSpec((1, 1, 1), lambda i, j: (i, 0, 0)),
            ],
            scratch_shapes=[
                pltpu.VMEM((tr, 1), jnp.float32),   # running max
                pltpu.VMEM((tr, 1), jnp.float32),   # running sum-exp
                pltpu.VMEM((tr, 1), jnp.float32),   # picked logit
            ],
        ),
        compiler_params=pltpu.CompilerParams(
            dimension_semantics=("parallel", "arbitrary"),
            vmem_limit_bytes=vmem_limit,
        ),
    )(logits, labels)

    # Final reduction of per-row-tile partials (f32). Plain divide so the
    # all-ignored case yields NaN, matching PyTorch's F.cross_entropy.
    return jnp.sum(sums) / jnp.sum(cnts)


class Criterion:
    """JAX/Pallas mirror of the PyTorch Criterion module."""

    def __init__(self, pad_index=None):
        self.ignore_index = pad_index

    def __call__(self, xs, y):
        loss = cross_entropy_pallas(xs, y, ignore_index=self.ignore_index)
        losses = {"loss": loss}
        return (losses["loss"], losses)


def _reference_loss(xs, y, ignore_index):
    """Pure-jnp reference for verification."""
    B, S, V = xs.shape
    ig = -100 if ignore_index is None else int(ignore_index)
    x = xs.reshape(-1, V).astype(jnp.float32)
    lbl = y.reshape(-1).astype(jnp.int32)
    lse = jax.nn.logsumexp(x, axis=-1)
    picked = jnp.take_along_axis(x, lbl[:, None], axis=-1)[:, 0]
    valid = (lbl != ig).astype(jnp.float32)
    return jnp.sum((lse - picked) * valid) / jnp.sum(valid)


if __name__ == "__main__":
    key = jax.random.PRNGKey(0)
    k1, k2, k3, k4, k5, k6 = jax.random.split(key, 6)

    # --- main case: mirrors the PyTorch module at small shapes ---------------
    B, S, V = 2, 8, 32
    pad_index = 0                       # exercises the ignore_index masking path
    xs = jax.random.normal(k1, (B, S, V), dtype=jnp.float32)
    y = jax.random.randint(k2, (B, S), 0, V, dtype=jnp.int32)

    crit = Criterion(pad_index=pad_index)
    loss, losses = crit(xs, y)
    loss = jax.block_until_ready(loss)
    ref = _reference_loss(xs, y, pad_index)
    assert jnp.allclose(loss, ref, rtol=1e-5, atol=1e-5), (loss, ref)

    # --- ragged rows + chunked ragged vocab (exercises both tail masks) ------
    B2, S2, V2 = 3, 7, 160              # N=21 rows; chunks of 128 -> tail of 32
    xs2 = jax.random.normal(k3, (B2, S2, V2), dtype=jnp.float32)
    y2 = jax.random.randint(k4, (B2, S2), 0, V2, dtype=jnp.int32)
    out2 = jax.block_until_ready(
        cross_entropy_pallas(xs2, y2, ignore_index=2, tile_rows=8, tile_v=128))
    ref2 = _reference_loss(xs2, y2, 2)
    assert jnp.allclose(out2, ref2, rtol=1e-5, atol=1e-5), (out2, ref2)

    # --- bf16 logits (native-dtype compare/max path, ragged rows) ------------
    B3, S3, V3 = 2, 5, 48
    xs3 = jax.random.normal(k5, (B3, S3, V3), dtype=jnp.float32).astype(jnp.bfloat16)
    y3 = jax.random.randint(k6, (B3, S3), 0, V3, dtype=jnp.int32)
    out3 = jax.block_until_ready(
        cross_entropy_pallas(xs3, y3, ignore_index=None, tile_rows=8))
    ref3 = _reference_loss(xs3.astype(jnp.float32), y3, None)
    assert jnp.allclose(out3, ref3, rtol=1e-4, atol=1e-4), (out3, ref3)

    print("KERNEL_OK")
</pallas_src>

<mosaic_0001>
module attributes {stable_mosaic.version = 11 : i64} {
  func.func @_ce_kernel(%arg0: i32, %arg1: i32, %arg2: memref<8x32xf32, #tpu.memory_space<vmem>>, %arg3: memref<8x1xi32, #tpu.memory_space<vmem>>, %arg4: memref<1x1x1xf32, #tpu.memory_space<vmem>>, %arg5: memref<1x1x1xf32, #tpu.memory_space<vmem>>, %arg6: memref<8x1xf32, #tpu.memory_space<vmem>>, %arg7: memref<8x1xf32, #tpu.memory_space<vmem>>, %arg8: memref<8x1xf32, #tpu.memory_space<vmem>>) attributes {dimension_semantics = [#tpu.dimension_semantics<parallel>, #tpu.dimension_semantics<arbitrary>], iteration_bounds = array<i64: 2, 1>, scalar_prefetch = 0 : i64, scratch_operands = 3 : i64, tpu.core_type = #tpu.core_type<tc>, window_params = [{transform_indices = @transform_0, window_bounds = array<i64: 8, 32>}, {transform_indices = @transform_1, window_bounds = array<i64: 8, 1>}, {transform_indices = @transform_2, window_bounds = array<i64: 1, 1, 1>}, {transform_indices = @transform_3, window_bounds = array<i64: 1, 1, 1>}]} {
    %c0_i32 = arith.constant 0 : i32
    %0 = arith.cmpi eq, %arg1, %c0_i32 : i32
    %c0_i32_0 = arith.constant 0 : i32
    %1 = arith.cmpi eq, %arg1, %c0_i32_0 : i32
    %2 = arith.extui %0 : i1 to i32
    %c0_i32_1 = arith.constant 0 : i32
    %3 = arith.cmpi ne, %2, %c0_i32_1 : i32
    scf.if %3 {
      %cst_23 = arith.constant 0xFF800000 : f32
      %39 = vector.broadcast %cst_23 : f32 to vector<8x1xf32>
      %c0_24 = arith.constant 0 : index
      %c0_25 = arith.constant 0 : index
      %40 = vector.load %arg6[%c0_24, %c0_25] : memref<8x1xf32, #tpu.memory_space<vmem>>, vector<8x1xf32>
      tpu.vector_store %arg6[%c0_24, %c0_25], %39 {strides = array<i32>} : memref<8x1xf32, #tpu.memory_space<vmem>>, vector<8x1xf32>,
      %cst_26 = arith.constant 0.000000e+00 : f32
      %41 = vector.broadcast %cst_26 : f32 to vector<8x1xf32>
      %c0_27 = arith.constant 0 : index
      %c0_28 = arith.constant 0 : index
      %42 = vector.load %arg7[%c0_27, %c0_28] : memref<8x1xf32, #tpu.memory_space<vmem>>, vector<8x1xf32>
      tpu.vector_store %arg7[%c0_27, %c0_28], %41 {strides = array<i32>} : memref<8x1xf32, #tpu.memory_space<vmem>>, vector<8x1xf32>,
      %cst_29 = arith.constant 0.000000e+00 : f32
      %43 = vector.broadcast %cst_29 : f32 to vector<8x1xf32>
      %c0_30 = arith.constant 0 : index
      %c0_31 = arith.constant 0 : index
      %44 = vector.load %arg8[%c0_30, %c0_31] : memref<8x1xf32, #tpu.memory_space<vmem>>, vector<8x1xf32>
      tpu.vector_store %arg8[%c0_30, %c0_31], %43 {strides = array<i32>} : memref<8x1xf32, #tpu.memory_space<vmem>>, vector<8x1xf32>,
    } else {
    }
    %c0 = arith.constant 0 : index
    %c0_2 = arith.constant 0 : index
    %4 = vector.load %arg3[%c0, %c0_2] : memref<8x1xi32, #tpu.memory_space<vmem>>, vector<8x1xi32>
    %5 = tpu.iota {dimensions = array<i32: 1>} : vector<1x32xi32>
    %c0_3 = arith.constant 0 : index
    %c0_4 = arith.constant 0 : index
    %6 = vector.load %arg2[%c0_3, %c0_4] : memref<8x32xf32, #tpu.memory_space<vmem>>, vector<8x32xf32>
    %c32_i32 = arith.constant 32 : i32
    %7 = arith.muli %arg1, %c32_i32 : i32
    %8 = vector.broadcast %7 : i32 to vector<8x1xi32>
    %9 = arith.subi %4, %8 : vector<8x1xi32>
    %10 = vector.broadcast %5 : vector<1x32xi32> to vector<8x32xi32>
    %11 = vector.broadcast %9 : vector<8x1xi32> to vector<8x32xi32>
    %12 = arith.cmpi eq, %10, %11 : vector<8x32xi32>
    %cst = arith.constant 0.000000e+00 : f32
    %13 = vector.broadcast %cst : f32 to vector<8x32xf32>
    %14 = arith.select %12, %6, %13 : vector<8x32xi1>, vector<8x32xf32>
    %cst_5 = arith.constant dense<0.000000e+00> : vector<8xf32>
    %15 = vector.multi_reduction <add>, %14, %cst_5 [1] : vector<8x32xf32> to vector<8xf32>
    %16 = vector.shape_cast %15 : vector<8xf32> to vector<8x1xf32>
    %c0_6 = arith.constant 0 : index
    %c0_7 = arith.constant 0 : index
    %17 = vector.load %arg8[%c0_6, %c0_7] : memref<8x1xf32, #tpu.memory_space<vmem>>, vector<8x1xf32>
    %18 = arith.addf %17, %16 : vector<8x1xf32>
    %c0_8 = arith.constant 0 : index
    %c0_9 = arith.constant 0 : index
    %19 = vector.load %arg8[%c0_8, %c0_9] : memref<8x1xf32, #tpu.memory_space<vmem>>, vector<8x1xf32>
    tpu.vector_store %arg8[%c0_8, %c0_9], %18 {strides = array<i32>} : memref<8x1xf32, #tpu.memory_space<vmem>>, vector<8x1xf32>,
    %cst_10 = arith.constant dense<0xFF800000> : vector<8xf32>
    %20 = vector.multi_reduction <maximumf>, %6, %cst_10 [1] : vector<8x32xf32> to vector<8xf32>
    %21 = vector.shape_cast %20 : vector<8xf32> to vector<8x1xf32>
    %c0_11 = arith.constant 0 : index
    %c0_12 = arith.constant 0 : index
    %22 = vector.load %arg6[%c0_11, %c0_12] : memref<8x1xf32, #tpu.memory_space<vmem>>, vector<8x1xf32>
    %23 = arith.maximumf %22, %21 : vector<8x1xf32>
    %24 = vector.broadcast %23 : vector<8x1xf32> to vector<8x32xf32>
    %25 = arith.subf %6, %24 : vector<8x32xf32>
    %26 = math.exp %25 : vector<8x32xf32>
    %c0_13 = arith.constant 0 : index
    %c0_14 = arith.constant 0 : index
    %27 = vector.load %arg7[%c0_13, %c0_14] : memref<8x1xf32, #tpu.memory_space<vmem>>, vector<8x1xf32>
    %c0_15 = arith.constant 0 : index
    %c0_16 = arith.constant 0 : index
    %28 = vector.load %arg6[%c0_15, %c0_16] : memref<8x1xf32, #tpu.memory_space<vmem>>, vector<8x1xf32>
    %29 = arith.subf %28, %23 : vector<8x1xf32>
    %30 = math.exp %29 : vector<8x1xf32>
    %31 = arith.mulf %27, %30 : vector<8x1xf32>
    %cst_17 = arith.constant dense<0.000000e+00> : vector<8xf32>
    %32 = vector.multi_reduction <add>, %26, %cst_17 [1] : vector<8x32xf32> to vector<8xf32>
    %33 = vector.shape_cast %32 : vector<8xf32> to vector<8x1xf32>
    %34 = arith.addf %31, %33 : vector<8x1xf32>
    %c0_18 = arith.constant 0 : index
    %c0_19 = arith.constant 0 : index
    %35 = vector.load %arg7[%c0_18, %c0_19] : memref<8x1xf32, #tpu.memory_space<vmem>>, vector<8x1xf32>
    tpu.vector_store %arg7[%c0_18, %c0_19], %34 {strides = array<i32>} : memref<8x1xf32, #tpu.memory_space<vmem>>, vector<8x1xf32>,
    %c0_20 = arith.constant 0 : index
    %c0_21 = arith.constant 0 : index
    %36 = vector.load %arg6[%c0_20, %c0_21] : memref<8x1xf32, #tpu.memory_space<vmem>>, vector<8x1xf32>
    tpu.vector_store %arg6[%c0_20, %c0_21], %23 {strides = array<i32>} : memref<8x1xf32, #tpu.memory_space<vmem>>, vector<8x1xf32>,
    %37 = arith.extui %1 : i1 to i32
    %c0_i32_22 = arith.constant 0 : i32
    %38 = arith.cmpi ne, %37, %c0_i32_22 : i32
    scf.if %38 {
      %c0_i32_23 = arith.constant 0 : i32
      %39 = vector.broadcast %c0_i32_23 : i32 to vector<8x1xi32>
      %40 = arith.cmpi ne, %4, %39 : vector<8x1xi32>
      %c0_24 = arith.constant 0 : index
      %c0_25 = arith.constant 0 : index
      %41 = vector.load %arg6[%c0_24, %c0_25] : memref<8x1xf32, #tpu.memory_space<vmem>>, vector<8x1xf32>
      %c0_26 = arith.constant 0 : index
      %c0_27 = arith.constant 0 : index
      %42 = vector.load %arg7[%c0_26, %c0_27] : memref<8x1xf32, #tpu.memory_space<vmem>>, vector<8x1xf32>
      %43 = math.log %42 : vector<8x1xf32>
      %44 = arith.addf %41, %43 : vector<8x1xf32>
      %c0_28 = arith.constant 0 : index
      %c0_29 = arith.constant 0 : index
      %45 = vector.load %arg8[%c0_28, %c0_29] : memref<8x1xf32, #tpu.memory_space<vmem>>, vector<8x1xf32>
      %46 = arith.subf %44, %45 : vector<8x1xf32>
      %cst_30 = arith.constant 0.000000e+00 : f32
      %47 = vector.broadcast %cst_30 : f32 to vector<8x1xf32>
      %48 = arith.select %40, %46, %47 : vector<8x1xi1>, vector<8x1xf32>
      %cst_31 = arith.constant dense<0.000000e+00> : vector<1xf32>
      %49 = vector.multi_reduction <add>, %48, %cst_31 [0] : vector<8x1xf32> to vector<1xf32>
      %50 = vector.shape_cast %49 : vector<1xf32> to vector<1x1xf32>
      %51 = vector.shape_cast %50 : vector<1x1xf32> to vector<1x1x1xf32>
      %c0_32 = arith.constant 0 : index
      %c0_33 = arith.constant 0 : index
      %c0_34 = arith.constant 0 : index
      %52 = vector.load %arg4[%c0_32, %c0_33, %c0_34] : memref<1x1x1xf32, #tpu.memory_space<vmem>>, vector<1x1x1xf32>
      tpu.vector_store %arg4[%c0_32, %c0_33, %c0_34], %51 {strides = array<i32>} : memref<1x1x1xf32, #tpu.memory_space<vmem>>, vector<1x1x1xf32>,
      %53 = arith.extui %40 : vector<8x1xi1> to vector<8x1xi32>
      %54 = arith.sitofp %53 : vector<8x1xi32> to vector<8x1xf32>
      %cst_35 = arith.constant dense<0.000000e+00> : vector<1xf32>
      %55 = vector.multi_reduction <add>, %54, %cst_35 [0] : vector<8x1xf32> to vector<1xf32>
      %56 = vector.shape_cast %55 : vector<1xf32> to vector<1x1xf32>
      %57 = vector.shape_cast %56 : vector<1x1xf32> to vector<1x1x1xf32>
      %c0_36 = arith.constant 0 : index
      %c0_37 = arith.constant 0 : index
      %c0_38 = arith.constant 0 : index
      %58 = vector.load %arg5[%c0_36, %c0_37, %c0_38] : memref<1x1x1xf32, #tpu.memory_space<vmem>>, vector<1x1x1xf32>
      tpu.vector_store %arg5[%c0_36, %c0_37, %c0_38], %57 {strides = array<i32>} : memref<1x1x1xf32, #tpu.memory_space<vmem>>, vector<1x1x1xf32>,
    } else {
    }
    return
  }
  func.func @transform_0(%arg0: i32, %arg1: i32) -> (i32, i32) {
    %c0_i32 = arith.constant 0 : i32
    return %arg0, %arg1 : i32, i32
  }
  func.func @transform_1(%arg0: i32, %arg1: i32) -> (i32, i32) {
    %c0_i32 = arith.constant 0 : i32
    %c0_i32_0 = arith.constant 0 : i32
    return %arg0, %c0_i32 : i32, i32
  }
  func.func @transform_2(%arg0: i32, %arg1: i32) -> (i32, i32, i32) {
    %c0_i32 = arith.constant 0 : i32
    %c0_i32_0 = arith.constant 0 : i32
    %c0_i32_1 = arith.constant 0 : i32
    return %arg0, %c0_i32, %c0_i32_0 : i32, i32, i32
  }
  func.func @transform_3(%arg0: i32, %arg1: i32) -> (i32, i32, i32) {
    %c0_i32 = arith.constant 0 : i32
    %c0_i32_0 = arith.constant 0 : i32
    %c0_i32_1 = arith.constant 0 : i32
    return %arg0, %c0_i32, %c0_i32_0 : i32, i32, i32
  }
}

</mosaic_0001>

<bundles_post_ra>
// kernel: tpu_custom_call.1
= control target key start
LH: loop header
LB: loop body
LE: loop exit
PB: predicated region body
PF: predicated region fallthrough
CT: control target
= control target key end

     0   :  { %s483_s12 = smov 0   ;;  %s485_s13 = smov 0   ;;  %s542_s0 = inlined_call_operand.vmem [shape: f32[16,32], index: 0, kind: input, shape index: {}]   ;;  %s543_s1 = inlined_call_operand.vmem [shape: s32[16,1], index: 1, kind: input, shape index: {}]   ;;  %s544_s2 = inlined_call_operand.vmem [shape: f32[2,1,1], index: 2, kind: output, shape index: {0}]   ;;  %s545_s3 = inlined_call_operand.vmem [shape: f32[2,1,1], index: 3, kind: output, shape index: {1}]  }
   0x1   :  { %s487_s14 = smov 0  }
   0x2 LB: > { %s26_s15 = sadd.s32 1, %s454_s13  ;;  %p395_p0 = scmp.ge.s32.totalorder %s458_s14, 1  ;;  %s458_s14 = sphi %s487_s14, %s14_s14   ;;  %s454_s13 = sphi %s485_s13, %s547_s13   ;;  %s450_s12 = sphi %s483_s12, %s546_s12  }
   0x3   : > { %p28_p1 = scmp.ge.s32.totalorder %s26_s15, 2  ;;  %p165_p2 = scmp.lt.s32.totalorder %s458_s14, 3 }
   0x5   : > { %s549_s15 = smov (%p28_p1, %s26_s15), 0  ;;  %p166_p3 = pnand %p395_p0, %p165_p2 }
   0x6   : > { %p196_p4 = scmp.lt.s32.totalorder (!%p166_p3), %s450_s12, 1  ;;  %vm217_vm0 = vcmask (!%p166_p3), 7168   ;;  %v460_v0 = vmov (!%p166_p3), -inf   ;;  %vm233_vm1 = vcmask (!%p166_p3), 261120   ;;  %v461_v3 = vmov (!%p166_p3), 0  }
   0x7   : > { %169 = sbr.rel (%p166_p3) target bundleno = 491 (0x1eb), region = 28  ;;  %218 = vst.msk [vmem:[#allocation2] sm:$0xff] (!%p166_p3), %vm217_vm0, %v460_v0  ;;  %428 = vset.pattern.permute.xlu0 (!%p166_p3), %v461_v3  ;;  %429 = vset.pattern.permute.xlu1 (!%p166_p3), %v461_v3  ;;  %v462_v4 = vmov (!%p166_p3), 0.0   ;;  %vm284_vm3 = vcmask (!%p166_p3), 0   ;;  %v222_v21 = vlaneseq (!%p166_p3) }
   0x8   : > { %219 = vst.msk [vmem:[#allocation3] sm:$0xff] (!%p166_p3), %vm217_vm0, %v462_v4  ;;  %220 = vst.msk [vmem:[#allocation4] sm:$0xff] (!%p166_p3), %vm217_vm0, %v462_v4 }
   0x9   : > { %v223_v22 = vand.u32 (!%p166_p3), 127, %v222_v21 }
   0xe   : > { %s551_s12 = smov (!%p196_p4, %s450_s12), 1  ;;  %v244_v14 = vld [vmem:[#allocation2] sm:$0xff] }
   0xf   : > { %s396_s16 = sshll.u32 %s551_s12, 3  ;;  %s212_s25 = scalar_lea.vmem %s545_s3, %s551_s12  ;;  %v254_v30 = vld [vmem:[#allocation3] sm:$0xff]  ;;  %v237_v34 = vld [vmem:[#allocation4] sm:$0xff] }
  0x10   : > { %s202_s19 = scalar_lea.vmem %s542_s0, %s396_s16  ;;  %s206_s22 = scalar_lea.vmem %s543_s1, %s396_s16 }
  0x11   : > { %v224_v1 = vld [vmem:[%s202_s19] sm:$0xff]  ;;  %s209_s28 = scalar_lea.vmem %s544_s2, %s551_s12 }
  0x12   : > { %v241_v2 = vsel %vm233_vm1, %v224_v1, -inf  ;;  %v221_v5 = vld [vmem:[%s206_s22] sm:$0xff] }
  0x13   : > { %242 = vmax.xlane.f32.xlu0 %v241_v2  ;;  %229 = vperm.xlu1 %429, %v221_v5   ;;  %vm268_vm2 = vcmp.ne.s32.totalorder %v221_v5, 0 }
  0x14   : > { %v398_v6 = vsel %vm268_vm2, 1.0, %v462_v4 }
  0x15   : > { %v288_v7 = vsel %vm217_vm0, %v398_v6, 0.0 }
  0x16   : > { %v289_v8 = vrot.slane %v288_v7, 4 }
  0x18   : > { %v290_v9 = vadd.f32 %v289_v8, %v288_v7 }
  0x1a   : > { %v291_v10 = vrot.slane %v290_v9, 2 }
  0x1c   : > { %v292_v11 = vadd.f32 %v291_v10, %v290_v9 }
  0x1e   : > { %v293_v12 = vrot.slane %v292_v11, 1 }
  0x20   : > { %v294_v13 = vadd.f32 %v293_v12, %v292_v11 }
  0x22   : > { %295 = vst.msk [vmem:[%s212_s25] sm:$0x1] %vm284_vm3, %v294_v13 }
  0x92   : > { %v230_v23 = vpop.permute.xlu1 %229 }
  0x93   : > { %vm231_vm4 = vcmp.eq.s32.totalorder %v223_v22, %v230_v23 }
  0x94   : > { %v232_v25 = vsel %vm231_vm4, %v224_v1, 0.0 }
  0x95   : > { %v234_v27 = vsel %vm233_vm1, %v232_v25, 0.0 }
  0xa0   : > { %v243_v15 = vpop.xlane.xlu0 %242 }
  0xa1   : > { %v245_v16 = vmax.f32 %v244_v14, %v243_v15 }
  0xa3   : > { %v255_v17 = vsub.f32 %v244_v14, %v245_v16  ;;  %264 = vst.msk [vmem:[#allocation2] sm:$0xff] %vm217_vm0, %v245_v16  ;;  %248 = vperm.xlu0 %428, %v245_v16  }
  0xa5   : > { %v256_v28 = vmul.f32 1.442695, %v255_v17 }
  0xaa   : > { %v269_v40 = vld [vmem:[#allocation2] sm:$0xff] }
 0x122   : > { %v249_v18 = vpop.permute.xlu0 %248 }
 0x123   : > { %v251_v19 = vsub.f32 %v224_v1, %v249_v18 }
 0x125   : > { %v252_v20 = vmul.f32 1.442695, %v251_v19 }
 0x127   : > { %430 = vpow2.f32 %v252_v20 }
 0x128   : > { %432 = vpow2.f32 %v256_v28 }
 0x131   : > { %v431_v24 = vpop.eup %430 }
 0x132   : > { %v259_v26 = vsel %vm233_vm1, %v431_v24, 0.0  ;;  %v433_v29 = vpop.eup %432 }
 0x133   : > { %260 = vadd.xlane.f32.xlu1 %v259_v26  ;;  %v258_v31 = vmul.f32 %v433_v29, %v254_v30 }
 0x137   : > { %235 = vadd.xlane.f32.xlu1 %v234_v27 }
 0x1c0   : > { %v261_v32 = vpop.xlane.xlu1 %260 }
 0x1c1   : > { %v262_v33 = vadd.f32 %v261_v32, %v258_v31 }
 0x1c3   : > { %263 = vst.msk [vmem:[#allocation3] sm:$0xff] %vm217_vm0, %v262_v33 }
 0x1c4   : > { %v236_v35 = vpop.xlane.xlu1 %235 }
 0x1c5   : > { %v238_v36 = vadd.f32 %v237_v34, %v236_v35 }
 0x1c7   : > { %240 = vst.msk [vmem:[#allocation4] sm:$0xff] %vm217_vm0, %v238_v36 }
 0x1ca   : > { %v270_v37 = vld [vmem:[#allocation3] sm:$0xff] }
 0x1cb   : > { %434 = vlog2.f32 %v270_v37 }
 0x1ce   : > { %v274_v41 = vld [vmem:[#allocation4] sm:$0xff] }
 0x1d5   : > { %v435_v38 = vpop.eup %434 }
 0x1d6   : > { %v272_v39 = vmul.f32 0.6931472, %v435_v38 }
 0x1d8   : > { %v273_v42 = vadd.f32 %v272_v39, %v269_v40 }
 0x1da   : > { %v275_v43 = vsub.f32 %v273_v42, %v274_v41 }
 0x1dc   : > { %v276_v44 = vsel %vm268_vm2, %v275_v43, 0.0 }
 0x1dd   : > { %v277_v45 = vsel %vm217_vm0, %v276_v44, 0.0 }
 0x1de   : > { %v278_v46 = vrot.slane %v277_v45, 4 }
 0x1e0   : > { %v279_v47 = vadd.f32 %v278_v46, %v277_v45 }
 0x1e2   : > { %v280_v48 = vrot.slane %v279_v47, 2 }
 0x1e4   : > { %v281_v49 = vadd.f32 %v280_v48, %v279_v47 }
 0x1e6   : > { %v282_v50 = vrot.slane %v281_v49, 1 }
 0x1e8   : > { %v283_v51 = vadd.f32 %v282_v50, %v281_v49 }
 0x1ea   : > { %285 = vst.msk [vmem:[%s209_s28] sm:$0x1] %vm284_vm3, %v283_v51 }
 0x1eb PF: > { %s14_s14 = sadd.s32 1, %s458_s14   ;;  %s546_s12 = smov %s454_s13 }
 0x1ec   : > { %p11_p5 = scmp.ge.s32.totalorder %s14_s14, 4   ;;  %s547_s13 = smov %s549_s15 }
 0x1ee   :  { %13 = sbr.rel (!%p11_p5) target bundleno = 2 (0x2), region = 81 }

</bundles_post_ra>
